<compile_context>
chip_gen: v6e
topology: v6e:2x2x1
jax: 0.10.0
libtpu: 0.0.40
codegen_flags: <defaults>
</compile_context>

<pallas_src>
import math

import jax
import jax.numpy as jnp
from jax.experimental import pallas as pl
from jax.experimental.pallas import tpu as pltpu


def _resolve_view_shape(in_shape, size):
    """torch.Tensor.view shape resolution, including a single -1 wildcard."""
    total = math.prod(in_shape)
    size = tuple(int(s) for s in size)
    if size.count(-1) > 1:
        raise ValueError("only one dimension can be inferred")
    if -1 in size:
        known = math.prod(s for s in size if s != -1)
        if known == 0 or total % known != 0:
            raise ValueError(f"shape {size} is invalid for input of size {total}")
        size = tuple(total // known if s == -1 else s for s in size)
    if math.prod(size) != total:
        raise ValueError(f"shape {size} is invalid for input of size {total}")
    return size


def _plan_copy(total, dtype):
    """Pick the shape the flat data is DMA'd as and the chunking along axis 0.

    Returns (work_shape, chunks) where chunks is a list of (start_row, n_rows)
    static slices, or None meaning "one whole-array DMA".  Chunks are kept at
    >= ~2 MiB each (review: keeps per-descriptor overhead negligible on v7x's
    3.2 TB/s HBM) and at most 4, so a few DMA engines overlap.
    """
    itemsize = jnp.dtype(dtype).itemsize
    lanes = None
    for cand in (1024, 512, 256, 128):
        if total % cand == 0:
            lanes = cand
            break
    if lanes is None:
        return (total,), None                       # ragged: single flat DMA

    rows = total // lanes
    min_rows = max(1, (2 << 20) // (lanes * itemsize))   # ~2 MiB per chunk
    n_chunks = max(1, min(4, rows // min_rows))
    if n_chunks == 1:
        return (rows, lanes), None                  # single DMA, no staging

    base, rem = divmod(rows, n_chunks)
    chunks, start = [], 0
    for i in range(n_chunks):
        size = base + (1 if i < rem else 0)
        chunks.append((start, size))
        start += size
    return (rows, lanes), chunks


def _make_hbm_copy_kernel(chunks):
    """Build a kernel that DMAs the input HBM ref to the output HBM ref."""
    if chunks is None:
        def kernel(x_ref, o_ref, sems):
            cp = pltpu.make_async_copy(x_ref, o_ref, sems.at[0])
            cp.start()
            cp.wait()
        return kernel, 1

    def kernel(x_ref, o_ref, sems):
        cps = [
            pltpu.make_async_copy(
                x_ref.at[pl.ds(start, size), :],
                o_ref.at[pl.ds(start, size), :],
                sems.at[i],
            )
            for i, (start, size) in enumerate(chunks)
        ]
        for cp in cps:          # issue all DMAs -> concurrent engines
            cp.start()
        for cp in cps:
            cp.wait()
    return kernel, len(chunks)


def pallas_view(x, *size, materialize=False):
    """Pallas equivalent of `View(*size)(x)` == x.view(size).

    materialize=False (default): metadata-only reshape — matches the real cost
    of torch.view on a contiguous tensor (no kernel launched).
    materialize=True: force a physical copy via an HBM->HBM DMA Pallas kernel.
    """
    if len(size) == 1 and isinstance(size[0], (tuple, list)):
        size = tuple(size[0])
    out_shape = _resolve_view_shape(x.shape, size)
    total = math.prod(x.shape)

    if not materialize or total == 0:
        return jnp.reshape(x, out_shape)

    work_shape, chunks = _plan_copy(total, x.dtype)
    kernel, n_sems = _make_hbm_copy_kernel(chunks)
    work = jnp.reshape(x, work_shape)               # metadata-only for contiguous x

    out = pl.pallas_call(
        kernel,
        out_shape=jax.ShapeDtypeStruct(work_shape, x.dtype),
        in_specs=[pl.BlockSpec(memory_space=pl.ANY)],
        out_specs=pl.BlockSpec(memory_space=pl.ANY),
        scratch_shapes=[pltpu.SemaphoreType.DMA((n_sems,))],
    )(work)
    return jnp.reshape(out, out_shape)


class PallasView:
    """Mirror of the PyTorch View module."""

    def __init__(self, *args):
        if len(args) == 1 and isinstance(args[0], (tuple, list)):
            self.size = tuple(args[0])
        else:
            self.size = tuple(args)

    def __call__(self, x, materialize=False):
        return pallas_view(x, *self.size, materialize=materialize)


if __name__ == "__main__":
    key = jax.random.PRNGKey(0)

    # Primary example: View(2, -1) on a (2, 4, 16, 16) activation.
    N, C, H, W = 2, 4, 16, 16
    x = jax.random.normal(key, (N, C, H, W), dtype=jnp.float32)
    ref = jnp.reshape(x, (2, -1))
    view = PallasView(2, -1)

    # Default path: metadata-only reshape (what torch.view actually costs).
    y_meta = jax.block_until_ready(view(x))
    assert y_meta.shape == (2, C * H * W), y_meta.shape
    assert bool(jnp.array_equal(y_meta, ref)), "metadata path mismatch"

    # Materialized path: HBM->HBM DMA Pallas kernel (single DMA here).
    y_dma = jax.block_until_ready(view(x, materialize=True))
    assert y_dma.shape == (2, C * H * W), y_dma.shape
    assert bool(jnp.array_equal(y_dma, ref)), "DMA path mismatch"

    # Ragged element count (total % 128 != 0): single whole-array DMA.
    k1, k2 = jax.random.split(key)
    x_rag = jax.random.normal(k1, (3, 5, 7), dtype=jnp.float32)
    y_rag = jax.block_until_ready(pallas_view(x_rag, -1, materialize=True))
    assert bool(jnp.array_equal(y_rag, jnp.reshape(x_rag, (-1,)))), "ragged mismatch"

    # Larger tensor exercising the chunked multi-DMA path (2 x 2 MiB chunks).
    x_big = jax.random.normal(k2, (4, 256, 1024), dtype=jnp.float32)
    y_big = jax.block_until_ready(pallas_view(x_big, 4, -1, materialize=True))
    assert bool(jnp.array_equal(y_big, jnp.reshape(x_big, (4, -1)))), "chunked mismatch"

    print("KERNEL_OK")
</pallas_src>

<mosaic_0001>
module attributes {stable_mosaic.version = 11 : i64} {
  func.func @kernel(%arg0: memref<2x1024xf32, #tpu.memory_space<any>>, %arg1: memref<2x1024xf32, #tpu.memory_space<any>>, %arg2: memref<1x!tpu.dma_semaphore, #tpu.memory_space<semaphore_mem>>) attributes {dimension_semantics = [], scalar_prefetch = 0 : i64, scratch_operands = 1 : i64, tpu.core_type = #tpu.core_type<tc>} {
    %c0_i32 = arith.constant 0 : i32
    %0 = tpu.memref_slice %arg2[%c0_i32] : memref<1x!tpu.dma_semaphore, #tpu.memory_space<semaphore_mem>> -> memref<1x!tpu.dma_semaphore, #tpu.memory_space<semaphore_mem>>
    %1 = tpu.memref_squeeze %0 : memref<1x!tpu.dma_semaphore, #tpu.memory_space<semaphore_mem>> -> memref<!tpu.dma_semaphore, #tpu.memory_space<semaphore_mem>>
    tpu.enqueue_dma source(%arg0 : memref<2x1024xf32, #tpu.memory_space<any>>) target(%arg1 : memref<2x1024xf32, #tpu.memory_space<any>>) target_semaphore(%1 : memref<!tpu.dma_semaphore, #tpu.memory_space<semaphore_mem>>)
    %c0_i32_0 = arith.constant 0 : i32
    %2 = tpu.memref_slice %arg2[%c0_i32_0] : memref<1x!tpu.dma_semaphore, #tpu.memory_space<semaphore_mem>> -> memref<1x!tpu.dma_semaphore, #tpu.memory_space<semaphore_mem>>
    %3 = tpu.memref_squeeze %2 : memref<1x!tpu.dma_semaphore, #tpu.memory_space<semaphore_mem>> -> memref<!tpu.dma_semaphore, #tpu.memory_space<semaphore_mem>>
    tpu.wait_dma2 semaphore(%3 : memref<!tpu.dma_semaphore, #tpu.memory_space<semaphore_mem>>) src(%arg0 : memref<2x1024xf32, #tpu.memory_space<any>>) dst(%arg1 : memref<2x1024xf32, #tpu.memory_space<any>>)
    return
  }
}

</mosaic_0001>

<bundles_post_ra>
// kernel: tpu_custom_call.1
= control target key start
LH: loop header
LB: loop body
LE: loop exit
PB: predicated region body
PF: predicated region fallthrough
CT: control target
= control target key end

     0   :  { %s29_s6 = smov [#allocation2]   ;;  %s30_s7 = smov 131072   ;;  %s48_s0 = inlined_call_operand.hbm [shape: f32[2,1024], index: 0, kind: input, shape index: {}]   ;;  %s49_s1 = inlined_call_operand.hbm [shape: f32[2,1024], index: 1, kind: output, shape index: {}]  }
   0x1   :  { %s31_s8 = smov 0  }
   0x2   :  { %12 = dma.general %s48_s0, 256, %s49_s1, %s29_s6, %s30_s7, [#allocation4], %s31_s8, 0  }
   0x3   :  { %27 = dma.done.wait [#allocation2], 256 }
   0x4   :  { %28 = vsyncadd [#allocation2], 4294967040 }
   0x5   :  { %17 = vsyncmov [#allocation2] }
   0x8   :  { %s18_s13 = vpop.sfrf %17 }
   0x9   :  { %p23_p0 = scmp.ne.s32.totalorder %s18_s13, 0 }
   0xb   :  { %22 = shalt.err (%p23_p0)  }

</bundles_post_ra>
